<compile_context>
chip_gen: v7x
topology: tpu7x:2x2x1
jax: 0.10.0
libtpu: 0.0.40
codegen_flags: <defaults>
</compile_context>

<pallas_src>
import jax
import jax.numpy as jnp
from jax import lax
from jax.experimental import pallas as pl
from jax.experimental.pallas import tpu as pltpu

_BIG = 1e30                                  # "never the min" sentinel (finite, f32-safe)
_VMEM_LIMIT_BYTES = 32 * 1024 * 1024         # safe on v5e/v6e/v7x
_RESIDENT_VMEM_BUDGET = 24 * 1024 * 1024     # headroom under the scoped limit


def _round_up(n, m):
    return (n + m - 1) // m * m


# ----------------------------------------------------------------------------
# Primary kernel: centers fully resident in VMEM, grid over batch tiles only.
# ----------------------------------------------------------------------------
def _resident_kernel(x_ref, c_ref, cc_ref, xx_ref, labels_ref, margin_ref, w_ref,
                     out_ref):
    n_chunks, c_tile, _ = c_ref.shape
    b_tile = x_ref.shape[0]

    x = x_ref[...]                       # (b_tile, D_pad) matmul dtype
    labels = labels_ref[...]             # (b_tile, 1) int32

    def body(k, carry):
        dist_acc, min_acc = carry
        # Resident centers chunk; A @ B^T form (contract feature axis of both
        # operands) so the centers chunk is never transposed in-kernel.
        c_chunk = c_ref[k]               # (c_tile, D_pad)
        xc = lax.dot_general(x, c_chunk,
                             dimension_numbers=(((1,), (1,)), ((), ())),
                             preferred_element_type=jnp.float32)
        d = cc_ref[k] - 2.0 * xc         # (b_tile, c_tile) f32, ||x||^2 folded out
        col = lax.broadcasted_iota(jnp.int32, d.shape, 1) + k * c_tile
        mask = labels == col
        # Wide accumulators: pure VPU elementwise, no per-chunk cross-lane reduce.
        dist_acc = dist_acc + jnp.where(mask, d, 0.0)
        min_acc = jnp.minimum(min_acc, jnp.where(mask, _BIG, d))
        return dist_acc, min_acc

    init = (jnp.zeros((b_tile, c_tile), jnp.float32),
            jnp.full((b_tile, c_tile), _BIG, jnp.float32))
    if n_chunks <= 8:
        dist_acc, min_acc = lax.fori_loop(0, n_chunks, body, init, unroll=True)
    else:
        dist_acc, min_acc = lax.fori_loop(0, n_chunks, body, init)

    margin = margin_ref[0, 0]
    w = w_ref[0, 0]
    # Single cross-lane (XLU) reduction per batch tile, in the epilogue only.
    dist = jnp.sum(dist_acc, axis=1, keepdims=True)
    dmin = jnp.min(min_acc, axis=1, keepdims=True)
    per_row = (margin + w * dist - (1.0 - w) * dmin
               + (2.0 * w - 1.0) * xx_ref[...])
    out_ref[...] = jnp.maximum(per_row, 0.0)


# ----------------------------------------------------------------------------
# Fallback kernel: centers streamed tile-by-tile, grid = (B tiles, C tiles).
# ----------------------------------------------------------------------------
def _streamed_kernel(x_ref, c_ref, cc_ref, xx_ref, labels_ref, margin_ref, w_ref,
                     out_ref, dist_acc, min_acc):
    k = pl.program_id(1)
    c_tile = c_ref.shape[0]

    @pl.when(k == 0)
    def _():
        dist_acc[...] = jnp.zeros_like(dist_acc)
        min_acc[...] = jnp.full_like(min_acc, _BIG)

    xc = lax.dot_general(x_ref[...], c_ref[...],
                         dimension_numbers=(((1,), (1,)), ((), ())),
                         preferred_element_type=jnp.float32)
    d = cc_ref[k] - 2.0 * xc             # cc is VMEM-resident; cheap leading-dim index
    col = lax.broadcasted_iota(jnp.int32, d.shape, 1) + k * c_tile
    mask = labels_ref[...] == col
    # Wide accumulators (b_tile, c_tile): no cross-lane reduce inside the k loop.
    dist_acc[...] += jnp.where(mask, d, 0.0)
    min_acc[...] = jnp.minimum(min_acc[...], jnp.where(mask, _BIG, d))

    @pl.when(k == pl.num_programs(1) - 1)
    def _():
        margin = margin_ref[0, 0]
        w = w_ref[0, 0]
        dist = jnp.sum(dist_acc[...], axis=1, keepdims=True)
        dmin = jnp.min(min_acc[...], axis=1, keepdims=True)
        per_row = (margin + w * dist - (1.0 - w) * dmin
                   + (2.0 * w - 1.0) * xx_ref[...])
        out_ref[...] = jnp.maximum(per_row, 0.0)


def trip_center_loss_min_margin(x, labels, margin, incenter_weight, centers, *,
                                b_tile=256, c_tile=512,
                                matmul_dtype=jnp.bfloat16,
                                resident_centers=True):
    """x: (B, D) float, labels: (B,) int in [0, C), margin/incenter_weight: scalars,
    centers: (C, D) float.  Returns scalar float32 loss.

    Note: bf16 MXU operands (default) slightly perturb distmat vs. the f32 PyTorch
    reference; pass matmul_dtype=jnp.float32 for exact-parity numerics."""
    x = jnp.asarray(x, jnp.float32)
    centers = jnp.asarray(centers, jnp.float32)
    labels = jnp.asarray(labels, jnp.int32)
    B, D = x.shape
    C, Dc = centers.shape
    assert D == Dc

    # ---- tile sizes ---------------------------------------------------------
    # Sublane-aligned B tiles; default 256 rows fills the 256x256 MXU (v6e/v7x).
    b_tile = min(b_tile, _round_up(B, 8))
    # v7x megacore: guarantee >= 2 blocks on the "parallel" B axis when possible
    # so both TensorCores get work.
    if b_tile >= 16 and _round_up(B, b_tile) == b_tile:
        b_tile = max(8, _round_up(b_tile // 2, 8))
    B_pad = _round_up(B, b_tile)

    # Lane/MXU-aligned class tiles; keep C_pad tight (multiple of 128).
    C_pad = _round_up(C, 128)
    c_tile = min(c_tile, C_pad)
    if C_pad % c_tile != 0:
        c_tile = 128
    n_ct = C_pad // c_tile

    D_pad = _round_up(D, 128)
    # TODO(synk): tile D with an in-kernel reduction loop once b_tile*D_pad /
    # c_tile*D_pad double-buffered tiles approach the VMEM budget (threshold is
    # half as large on v7x's 64 MiB TensorCore).

    mm_bytes = jnp.dtype(matmul_dtype).itemsize
    # Conservative VMEM estimate for the resident-centers path (assume every input
    # is double-buffered even though the constant-index centers block is fetched once).
    resident_bytes = (2 * C_pad * D_pad * mm_bytes      # resident centers
                      + 2 * b_tile * D_pad * mm_bytes   # streamed x tiles
                      + 2 * C_pad * 4                   # resident ||c||^2
                      + 2 * b_tile * c_tile * 4         # fori-loop sum/min accumulators
                      + 8 * b_tile * 4)                 # xx / labels / out
    use_resident = resident_centers and resident_bytes <= _RESIDENT_VMEM_BUDGET

    # ---- operand prep (cast BEFORE padding: no extra f32-sized HBM copies) ----
    xx = jnp.sum(x * x, axis=1, keepdims=True)                      # (B, 1) f32
    cc = jnp.sum(centers * centers, axis=1)[None, :]                # (1, C) f32
    xx = jnp.pad(xx, ((0, B_pad - B), (0, 0)))
    # Padded classes get a huge squared norm -> can never win the min.
    cc = jnp.pad(cc, ((0, 0), (0, C_pad - C)), constant_values=_BIG)

    x_m = jnp.pad(x.astype(matmul_dtype), ((0, B_pad - B), (0, D_pad - D)))
    c_m = jnp.pad(centers.astype(matmul_dtype), ((0, C_pad - C), (0, D_pad - D)))
    labels2d = jnp.pad(labels, (0, B_pad - B), constant_values=-1).reshape(B_pad, 1)

    m = jnp.asarray(margin, jnp.float32).reshape(1, 1)
    w = jnp.asarray(incenter_weight, jnp.float32).reshape(1, 1)

    # Chunked views: the kernel indexes class chunks along a leading dim (cheap
    # dynamic first-axis index; no dynamic lane/sublane slicing of VMEM refs).
    c_m3 = c_m.reshape(n_ct, c_tile, D_pad)
    cc3 = cc.reshape(n_ct, 1, c_tile)

    if use_resident:
        grid = (B_pad // b_tile,)
        per_row = pl.pallas_call(
            _resident_kernel,
            out_shape=jax.ShapeDtypeStruct((B_pad, 1), jnp.float32),
            grid_spec=pltpu.PrefetchScalarGridSpec(
                num_scalar_prefetch=0,
                grid=grid,
                in_specs=[
                    pl.BlockSpec((b_tile, D_pad), lambda i: (i, 0)),         # x tile
                    pl.BlockSpec((n_ct, c_tile, D_pad), lambda i: (0, 0, 0)),  # centers (resident)
                    pl.BlockSpec((n_ct, 1, c_tile), lambda i: (0, 0, 0)),    # ||c||^2 (resident)
                    pl.BlockSpec((b_tile, 1), lambda i: (i, 0)),             # ||x||^2
                    pl.BlockSpec((b_tile, 1), lambda i: (i, 0)),             # labels
                    pl.BlockSpec(memory_space=pltpu.MemorySpace.SMEM),       # margin
                    pl.BlockSpec(memory_space=pltpu.MemorySpace.SMEM),       # incenter_weight
                ],
                out_specs=pl.BlockSpec((b_tile, 1), lambda i: (i, 0))),
            compiler_params=pltpu.CompilerParams(
                dimension_semantics=("parallel",),
                vmem_limit_bytes=_VMEM_LIMIT_BYTES),
        )(x_m, c_m3, cc3, xx, labels2d, m, w)
    else:
        grid = (B_pad // b_tile, n_ct)
        per_row = pl.pallas_call(
            _streamed_kernel,
            out_shape=jax.ShapeDtypeStruct((B_pad, 1), jnp.float32),
            grid_spec=pltpu.PrefetchScalarGridSpec(
                num_scalar_prefetch=0,
                grid=grid,
                in_specs=[
                    pl.BlockSpec((b_tile, D_pad), lambda i, k: (i, 0)),      # x tile
                    pl.BlockSpec((c_tile, D_pad), lambda i, k: (k, 0)),      # centers tile (streamed)
                    pl.BlockSpec((n_ct, 1, c_tile), lambda i, k: (0, 0, 0)), # ||c||^2 (resident)
                    pl.BlockSpec((b_tile, 1), lambda i, k: (i, 0)),          # ||x||^2
                    pl.BlockSpec((b_tile, 1), lambda i, k: (i, 0)),          # labels
                    pl.BlockSpec(memory_space=pltpu.MemorySpace.SMEM),       # margin
                    pl.BlockSpec(memory_space=pltpu.MemorySpace.SMEM),       # incenter_weight
                ],
                out_specs=pl.BlockSpec((b_tile, 1), lambda i, k: (i, 0)),
                scratch_shapes=[pltpu.VMEM((b_tile, c_tile), jnp.float32),   # running masked sum
                                pltpu.VMEM((b_tile, c_tile), jnp.float32)]), # running min
            compiler_params=pltpu.CompilerParams(
                dimension_semantics=("parallel", "arbitrary"),
                vmem_limit_bytes=_VMEM_LIMIT_BYTES),
        )(x_m, c_m, cc3, xx, labels2d, m, w)

    # Final (tiny) reduction over the real rows; padded rows are discarded.
    return jnp.sum(per_row[:B, 0]) / B


def _reference_loss(x, labels, margin, w, centers, matmul_dtype=jnp.float32):
    # Pure-JAX reference mirroring the PyTorch forward (optionally with the same
    # bf16-operand / f32-accumulate matmul numerics as the kernel).
    B = x.shape[0]
    C = centers.shape[0]
    xc = jnp.dot(x.astype(matmul_dtype), centers.astype(matmul_dtype).T,
                 preferred_element_type=jnp.float32)
    distmat = (jnp.sum(x * x, axis=1, keepdims=True)
               + jnp.sum(centers * centers, axis=1)[None, :]
               - 2.0 * xc)
    mask = labels[:, None] == jnp.arange(C)[None, :]
    dist = jnp.sum(jnp.where(mask, distmat, 0.0), axis=1)
    dist_min = jnp.min(jnp.where(mask, jnp.inf, distmat), axis=1)
    per = jnp.maximum(margin + w * dist - (1.0 - w) * dist_min, 0.0)
    return jnp.sum(per) / B


if __name__ == "__main__":
    num_classes = 10
    feat_dim = 2
    batch = 8

    key = jax.random.PRNGKey(0)
    k_c, k_x, k_l = jax.random.split(key, 3)

    # Deterministic parameter init (mimics torch.randn(num_classes, feat_dim)).
    centers = jax.random.normal(k_c, (num_classes, feat_dim), dtype=jnp.float32)
    x = jax.random.normal(k_x, (batch, feat_dim), dtype=jnp.float32)
    labels = jax.random.randint(k_l, (batch,), 0, num_classes, dtype=jnp.int32)
    margin = 0.5
    incenter_weight = 0.6

    # Default path: resident centers, bf16 MXU operands / f32 accumulation.
    loss = trip_center_loss_min_margin(x, labels, margin, incenter_weight, centers)
    loss = jax.block_until_ready(loss)
    ref_bf16 = _reference_loss(x, labels, margin, incenter_weight, centers,
                               matmul_dtype=jnp.bfloat16)
    assert jnp.allclose(loss, ref_bf16, rtol=1e-4, atol=1e-4), (loss, ref_bf16)

    # f32 matmul path for parity with the f32 PyTorch numerics.
    loss_f32 = trip_center_loss_min_margin(x, labels, margin, incenter_weight,
                                           centers, matmul_dtype=jnp.float32)
    loss_f32 = jax.block_until_ready(loss_f32)
    ref_f32 = _reference_loss(x, labels, margin, incenter_weight, centers,
                              matmul_dtype=jnp.float32)
    assert jnp.allclose(loss_f32, ref_f32, rtol=1e-4, atol=1e-4), (loss_f32, ref_f32)

    # Streamed-centers fallback (used when centers do not fit the VMEM budget).
    loss_str = trip_center_loss_min_margin(x, labels, margin, incenter_weight,
                                           centers, resident_centers=False)
    loss_str = jax.block_until_ready(loss_str)
    assert jnp.allclose(loss_str, ref_bf16, rtol=1e-4, atol=1e-4), (loss_str, ref_bf16)

    print("KERNEL_OK")
</pallas_src>

<mosaic_0001>
module attributes {stable_mosaic.version = 11 : i64} {
  func.func @_resident_kernel(%arg0: i32, %arg1: memref<8x128xbf16, #tpu.memory_space<vmem>>, %arg2: memref<1x128x128xbf16, #tpu.memory_space<vmem>>, %arg3: memref<1x1x128xf32, #tpu.memory_space<vmem>>, %arg4: memref<8x1xf32, #tpu.memory_space<vmem>>, %arg5: memref<8x1xi32, #tpu.memory_space<vmem>>, %arg6: memref<1x1xf32, #tpu.memory_space<smem>>, %arg7: memref<1x1xf32, #tpu.memory_space<smem>>, %arg8: memref<8x1xf32, #tpu.memory_space<vmem>>) attributes {dimension_semantics = [#tpu.dimension_semantics<parallel>], iteration_bounds = array<i64: 1>, scalar_prefetch = 0 : i64, scratch_operands = 0 : i64, tpu.core_type = #tpu.core_type<tc>, window_params = [{transform_indices = @transform_0, window_bounds = array<i64: 8, 128>}, {pipeline_mode = #tpu.pipeline_mode<synchronous>, transform_indices = @transform_1, window_bounds = array<i64: 1, 128, 128>}, {pipeline_mode = #tpu.pipeline_mode<synchronous>, transform_indices = @transform_2, window_bounds = array<i64: 1, 1, 128>}, {transform_indices = @transform_3, window_bounds = array<i64: 8, 1>}, {transform_indices = @transform_4, window_bounds = array<i64: 8, 1>}, {transform_indices = @transform_5, window_bounds = array<i64: 1, 1>}, {transform_indices = @transform_6, window_bounds = array<i64: 1, 1>}, {transform_indices = @transform_7, window_bounds = array<i64: 8, 1>}]} {
    %c0 = arith.constant 0 : index
    %c0_0 = arith.constant 0 : index
    %0 = vector.load %arg1[%c0, %c0_0] : memref<8x128xbf16, #tpu.memory_space<vmem>>, vector<8x128xbf16>
    %c0_1 = arith.constant 0 : index
    %c0_2 = arith.constant 0 : index
    %1 = vector.load %arg5[%c0_1, %c0_2] : memref<8x1xi32, #tpu.memory_space<vmem>>, vector<8x1xi32>
    %cst = arith.constant 0.000000e+00 : f32
    %2 = vector.broadcast %cst : f32 to vector<8x128xf32>
    %cst_3 = arith.constant 1.000000e+30 : f32
    %3 = vector.broadcast %cst_3 : f32 to vector<8x128xf32>
    %c0_i32 = arith.constant 0 : i32
    %4 = arith.index_cast %c0_i32 : i32 to index
    %c0_4 = arith.constant 0 : index
    %c0_5 = arith.constant 0 : index
    %5 = vector.load %arg2[%4, %c0_4, %c0_5] : memref<1x128x128xbf16, #tpu.memory_space<vmem>>, vector<1x128x128xbf16>
    %6 = vector.shape_cast %5 : vector<1x128x128xbf16> to vector<128x128xbf16>
    %cst_6 = arith.constant dense<0.000000e+00> : vector<8x128xf32>
    %7 = tpu.matmul %0, %6, %cst_6 {dimension_numbers = #tpu.dot_dimension_numbers<[1], [1], [0], [0], [0, 0, 1, 0], [], []>} : vector<8x128xbf16>, vector<128x128xbf16>, vector<8x128xf32> -> vector<8x128xf32>
    %8 = arith.index_cast %c0_i32 : i32 to index
    %c0_7 = arith.constant 0 : index
    %c0_8 = arith.constant 0 : index
    %9 = vector.load %arg3[%8, %c0_7, %c0_8] : memref<1x1x128xf32, #tpu.memory_space<vmem>>, vector<1x1x128xf32>
    %10 = vector.shape_cast %9 : vector<1x1x128xf32> to vector<1x128xf32>
    %cst_9 = arith.constant 2.000000e+00 : f32
    %11 = vector.broadcast %cst_9 : f32 to vector<8x128xf32>
    %12 = arith.mulf %11, %7 : vector<8x128xf32>
    %13 = vector.broadcast %10 : vector<1x128xf32> to vector<8x128xf32>
    %14 = arith.subf %13, %12 : vector<8x128xf32>
    %15 = tpu.iota {dimensions = array<i32: 1>} : vector<8x128xi32>
    %c128_i32 = arith.constant 128 : i32
    %16 = arith.muli %c0_i32, %c128_i32 : i32
    %17 = vector.broadcast %16 : i32 to vector<8x128xi32>
    %18 = arith.addi %15, %17 : vector<8x128xi32>
    %19 = vector.broadcast %1 : vector<8x1xi32> to vector<8x128xi32>
    %20 = arith.cmpi eq, %19, %18 : vector<8x128xi32>
    %cst_10 = arith.constant 0.000000e+00 : f32
    %21 = vector.broadcast %cst_10 : f32 to vector<8x128xf32>
    %22 = arith.select %20, %14, %21 : vector<8x128xi1>, vector<8x128xf32>
    %23 = arith.addf %2, %22 : vector<8x128xf32>
    %cst_11 = arith.constant 1.000000e+30 : f32
    %24 = vector.broadcast %cst_11 : f32 to vector<8x128xf32>
    %25 = arith.select %20, %24, %14 : vector<8x128xi1>, vector<8x128xf32>
    %26 = arith.minimumf %3, %25 : vector<8x128xf32>
    %c1_i32 = arith.constant 1 : i32
    %c0_12 = arith.constant 0 : index
    %c0_13 = arith.constant 0 : index
    %27 = memref.load %arg6[%c0_12, %c0_13] : memref<1x1xf32, #tpu.memory_space<smem>>
    %c0_14 = arith.constant 0 : index
    %c0_15 = arith.constant 0 : index
    %28 = memref.load %arg7[%c0_14, %c0_15] : memref<1x1xf32, #tpu.memory_space<smem>>
    %cst_16 = arith.constant dense<0.000000e+00> : vector<8xf32>
    %29 = vector.multi_reduction <add>, %23, %cst_16 [1] : vector<8x128xf32> to vector<8xf32>
    %30 = vector.shape_cast %29 : vector<8xf32> to vector<8x1xf32>
    %cst_17 = arith.constant dense<0x7F800000> : vector<8xf32>
    %31 = vector.multi_reduction <minimumf>, %26, %cst_17 [1] : vector<8x128xf32> to vector<8xf32>
    %32 = vector.shape_cast %31 : vector<8xf32> to vector<8x1xf32>
    %33 = vector.broadcast %28 : f32 to vector<8x1xf32>
    %34 = arith.mulf %33, %30 : vector<8x1xf32>
    %35 = vector.broadcast %27 : f32 to vector<8x1xf32>
    %36 = arith.addf %35, %34 : vector<8x1xf32>
    %cst_18 = arith.constant 1.000000e+00 : f32
    %37 = arith.subf %cst_18, %28 : f32
    %38 = vector.broadcast %37 : f32 to vector<8x1xf32>
    %39 = arith.mulf %38, %32 : vector<8x1xf32>
    %40 = arith.subf %36, %39 : vector<8x1xf32>
    %cst_19 = arith.constant 2.000000e+00 : f32
    %41 = arith.mulf %cst_19, %28 : f32
    %cst_20 = arith.constant 1.000000e+00 : f32
    %42 = arith.subf %41, %cst_20 : f32
    %c0_21 = arith.constant 0 : index
    %c0_22 = arith.constant 0 : index
    %43 = vector.load %arg4[%c0_21, %c0_22] : memref<8x1xf32, #tpu.memory_space<vmem>>, vector<8x1xf32>
    %44 = vector.broadcast %42 : f32 to vector<8x1xf32>
    %45 = arith.mulf %44, %43 : vector<8x1xf32>
    %46 = arith.addf %40, %45 : vector<8x1xf32>
    %cst_23 = arith.constant 0.000000e+00 : f32
    %47 = vector.broadcast %cst_23 : f32 to vector<8x1xf32>
    %48 = arith.maximumf %46, %47 : vector<8x1xf32>
    %c0_24 = arith.constant 0 : index
    %c0_25 = arith.constant 0 : index
    %49 = vector.load %arg8[%c0_24, %c0_25] : memref<8x1xf32, #tpu.memory_space<vmem>>, vector<8x1xf32>
    tpu.vector_store %arg8[%c0_24, %c0_25], %48 {strides = array<i32>} : memref<8x1xf32, #tpu.memory_space<vmem>>, vector<8x1xf32>,
    return
  }
  func.func @transform_0(%arg0: i32) -> (i32, i32) {
    %c0_i32 = arith.constant 0 : i32
    %c0_i32_0 = arith.constant 0 : i32
    return %arg0, %c0_i32 : i32, i32
  }
  func.func @transform_1(%arg0: i32) -> (i32, i32, i32) {
    %c0_i32 = arith.constant 0 : i32
    %c0_i32_0 = arith.constant 0 : i32
    %c0_i32_1 = arith.constant 0 : i32
    %c0_i32_2 = arith.constant 0 : i32
    return %c0_i32, %c0_i32_0, %c0_i32_1 : i32, i32, i32
  }
  func.func @transform_2(%arg0: i32) -> (i32, i32, i32) {
    %c0_i32 = arith.constant 0 : i32
    %c0_i32_0 = arith.constant 0 : i32
    %c0_i32_1 = arith.constant 0 : i32
    %c0_i32_2 = arith.constant 0 : i32
    return %c0_i32, %c0_i32_0, %c0_i32_1 : i32, i32, i32
  }
  func.func @transform_3(%arg0: i32) -> (i32, i32) {
    %c0_i32 = arith.constant 0 : i32
    %c0_i32_0 = arith.constant 0 : i32
    return %arg0, %c0_i32 : i32, i32
  }
  func.func @transform_4(%arg0: i32) -> (i32, i32) {
    %c0_i32 = arith.constant 0 : i32
    %c0_i32_0 = arith.constant 0 : i32
    return %arg0, %c0_i32 : i32, i32
  }
  func.func @transform_5(%arg0: i32) -> (i32, i32) {
    %c0_i32 = arith.constant 0 : i32
    %c0_i32_0 = arith.constant 0 : i32
    %c0_i32_1 = arith.constant 0 : i32
    return %c0_i32, %c0_i32_0 : i32, i32
  }
  func.func @transform_6(%arg0: i32) -> (i32, i32) {
    %c0_i32 = arith.constant 0 : i32
    %c0_i32_0 = arith.constant 0 : i32
    %c0_i32_1 = arith.constant 0 : i32
    return %c0_i32, %c0_i32_0 : i32, i32
  }
  func.func @transform_7(%arg0: i32) -> (i32, i32) {
    %c0_i32 = arith.constant 0 : i32
    %c0_i32_0 = arith.constant 0 : i32
    return %arg0, %c0_i32 : i32, i32
  }
}

</mosaic_0001>

<bundles_post_ra>
// kernel: tpu_custom_call.1
= control target key start
LH: loop header
LB: loop body
LE: loop exit
PB: predicated region body
PF: predicated region fallthrough
CT: control target
= control target key end

     0   :  { %14 = vsyncpa [#allocation5], 0  ;;  %s274_s24 = smov [#allocation4]   ;;  %s359_s0 = inlined_call_operand.vmem [shape: bf16[8,128], index: 0, kind: input, shape index: {}]   ;;  %s360_s1 = inlined_call_operand.hbm [shape: bf16[1,128,128], index: 1, kind: input, shape index: {}]   ;;  %s361_s2 = inlined_call_operand.vmem [shape: f32[1,1,128], index: 2, kind: input, shape index: {}]   ;;  %s362_s3 = inlined_call_operand.vmem [shape: f32[8,1], index: 3, kind: input, shape index: {}]   ;;  %s363_s4 = inlined_call_operand.vmem [shape: s32[8,1], index: 4, kind: input, shape index: {}]   ;;  %s364_s5 = inlined_call_operand.<no memory space> [shape: f32[1,1], index: 5, kind: input, shape index: {}]   ;;  %s365_s6 = inlined_call_operand.<no memory space> [shape: f32[1,1], index: 6, kind: input, shape index: {}]   ;;  %s366_s7 = inlined_call_operand.vmem [shape: f32[8,1], index: 7, kind: output, shape index: {}]  }
   0x1   :  { %s22_s25 = sshll.u32 %s274_s24, 4  ;;  %s250_s28 = scalar_lea.hbm %s360_s1, 1024  ;;  %s23_s25 = int_to_ptr.vmem [resolvable:$true] %s22_s25 }
   0x2   :  { %p251_p0 = scmp.ne.s32.totalorder %s360_s1, %s250_s28  ;;  %p254_p1 = scmp.lt.u32.totalorder %s250_s28, %s360_s1 }
   0x4   :  { %p256_p2 = pnand %p254_p1, %p251_p0 }
   0x6   :  { %259 = shalt.err (!%p256_p2)
}
   0x7   :  { %s260_s10 = scalar_lea.vmem %s23_s25, 1024  ;;  %p265_p4 = scmp.lt.s32.totalorder %s23_s25, %s23_s25 }
   0x8   :  { %p261_p3 = scmp.ne.s32.totalorder %s23_s25, %s260_s10  ;;  %p266_p5 = scmp.lt.s32.totalorder %s260_s10, %s260_s10 }
   0xa   :  { %p267_p6 = por %p266_p5, %p265_p4 }
   0xc   :  { %p268_p7 = pnand %p267_p6, %p261_p3 }
   0xe   :  { %271 = shalt.err (!%p268_p7)
}
   0xf   :  { %s275_s11 = smov 64   ;;  %s276_s12 = smov 4  }
  0x10   :  { %28 = dma.hbm_to_vmem [thread:$0]  %s360_s1, 1024, %s23_s25, [#allocation5], %s275_s11, %s275_s11, %s276_s12  }
  0x11   :  { %272 = dma.done.wait [#allocation5], 1024  }
  0x12   :  { %273 = vsyncadd [#allocation5], 4294966272  ;;  %v277_v0 = vmov 0.0   ;;  %vm278_vm0 = vmmov 0   ;;  %v279_v1 = vmov 0   ;;  %v242_v2 = vld [vmem:[#allocation4] sm:$0xff]   ;;  %v158_v12 = vlaneseq }
  0x13   :  { %215 = vmatprep.subr.bf16.mxu0 %v277_v0  ;;  %231 = vmatprep.mubr.msk.bf16.mxu0 %vm278_vm0, %v277_v0  ;;  %v243_v3 = vld [vmem:[#allocation4 + $0x8] sm:$0xff]   ;;  %v44_v4 = vld [vmem:[%s363_s4] sm:$0xff]  ;;  %v244_v5 = vld [vmem:[#allocation4 + $0x10] sm:$0xff]   ;;  %s182_s20 = smul.f32 2.0, %s365_s6  ;;  %s178_s23 = ssub.f32 1.0, %s365_s6  ;;  %v174_v25 = vstv %s365_s6  ;;  %v176_v26 = vstv %s364_s5  ;;  %vm189_vm2 = vcmask 7168  }
  0x14   :  { %241 = vset.pattern.permute.xlu0 %v279_v1  ;;  %216 = vmatpush3.bf16.xpose.msra.mxu0 %v242_v2  ;;  %v245_v6 = vld [vmem:[#allocation4 + $0x18] sm:$0xff]   ;;  %v246_v7 = vld [vmem:[#allocation4 + $0x20] sm:$0xff]   ;;  %v247_v8 = vld [vmem:[#allocation4 + $0x28] sm:$0xff]   ;;  %v159_v13 = vand.u32 127, %v158_v12 }
  0x15   :  { %217 = vmatprep.subr.bf16.mxu0 %v277_v0  ;;  %161 = vperm.xlu0 %241, %v44_v4   ;;  %v248_v9 = vld [vmem:[#allocation4 + $0x30] sm:$0xff]   ;;  %v249_v10 = vld [vmem:[#allocation4 + $0x38] sm:$0xff]   ;;  %v43_v11 = vld [vmem:[%s359_s0] sm:$0xf]  ;;  %v179_v28 = vstv %s178_s23 }
  0x16   :  { %v204_v16 = vld [vmem:[%s361_s2] ss:$0 sm:$0xff]  ;;  %s205_s2 = sadd.f32 -1.0, %s182_s20 }
  0x17   :  { %v184_v29 = vld [vmem:[%s362_s3] sm:$0xff] }
  0x18   :  { %v185_v30 = vstv %s205_s2 }
  0x19   :  { %v186_v34 = vmul.f32 %v185_v30, %v184_v29 }
  0x1c   :  { %218 = vmatpush3.bf16.xpose.msra.mxu0 %v243_v3 }
  0x1d   :  { %219 = vmatprep.subr.bf16.mxu0 %v277_v0 }
  0x24   :  { %220 = vmatpush3.bf16.xpose.msra.mxu0 %v244_v5 }
  0x25   :  { %221 = vmatprep.subr.bf16.mxu0 %v277_v0 }
  0x2c   :  { %222 = vmatpush3.bf16.xpose.msra.mxu0 %v245_v6 }
  0x2d   :  { %223 = vmatprep.subr.bf16.mxu0 %v277_v0 }
  0x34   :  { %224 = vmatpush3.bf16.xpose.msra.mxu0 %v246_v7 }
  0x35   :  { %225 = vmatprep.subr.bf16.mxu0 %v277_v0 }
  0x3c   :  { %226 = vmatpush3.bf16.xpose.msra.mxu0 %v247_v8 }
  0x3d   :  { %227 = vmatprep.subr.bf16.mxu0 %v277_v0 }
  0x44   :  { %228 = vmatpush3.bf16.xpose.msra.mxu0 %v248_v9 }
  0x45   :  { %229 = vmatprep.subr.bf16.mxu0 %v277_v0 }
  0x4c   :  { %230 = vmatpush3.bf16.xpose.msra.mxu0 %v249_v10 }
  0x53   :  { %232 = vmatmul.mubr.bf16.vlgmr.msra.gmra.mrb[0].mxu0 %v43_v11 }
  0x94   :  { %v162_v14 = vpop.permute.xlu0 %161 }
  0x95   :  { %vm163_vm1 = vcmp.eq.s32.totalorder %v162_v14, %v159_v13 }
 0x126   :  { %v143_v15 = vpop.f32.mrb[0].mxu0 }
 0x127   :  { %v150_v17 = vmul.f32 2.0, %v143_v15  ;;  %v233_v18 = vpop.f32.mrb[1].mxu0 }
 0x128   :  { %v146_v19 = vpop.f32.mrb[2].mxu0 }
 0x129   :  { %v234_v20 = vpop.f32.mrb[3].mxu0  ;;  %v157_v21 = vsub.f32 %v204_v16, %v150_v17 }
 0x12b   :  { %v164_v22 = vsel %vm163_vm1, %v157_v21, 0.0  ;;  %v166_v23 = vsel %vm163_vm1, 1e+30, %v157_v21 }
 0x12c   :  { %170 = vadd.xlane.f32.xlu0 %v164_v22  ;;  %v167_v24 = vmin.f32 %v166_v23, 1e+30 }
 0x12e   :  { %172 = vmin.xlane.f32.xlu1 %v167_v24 }
 0x1b9   :  { %v171_v27 = vpop.xlane.xlu0 %170 }
 0x1ba   :  { %v175_v31 = vmul.f32 %v174_v25, %v171_v27 }
 0x1bb   :  { %v173_v32 = vpop.xlane.xlu1 %172 }
 0x1bc   :  { %v177_v33 = vadd.f32 %v176_v26, %v175_v31  ;;  %v180_v35 = vmul.f32 %v179_v28, %v173_v32 }
 0x1be   :  { %v181_v36 = vsub.f32 %v177_v33, %v180_v35 }
 0x1c0   :  { %v187_v37 = vadd.f32 %v186_v34, %v181_v36 }
 0x1c2   :  { %v188_v38 = vmax.f32 %v187_v37, 0.0 }
 0x1c4   :  { %190 = vst.msk [vmem:[%s366_s7] sm:$0xff] %vm189_vm2, %v188_v38 }
 0x1c5   :  { %195 = vsyncpa [#allocation5], 1 }

</bundles_post_ra>
